<compile_context>
chip_gen: v7x
topology: tpu7x:2x2x1
jax: 0.10.0
libtpu: 0.0.40
codegen_flags: <defaults>
</compile_context>

<pallas_src>
import functools

import jax
import jax.numpy as jnp
from jax import lax
from jax.experimental import pallas as pl
from jax.experimental.pallas import tpu as pltpu


def _attention_kernel(x_ref, wqkv_ref, wout_ref, bout_ref, o_ref,
                      q_scr, k_scr, v_scr, out_scr, *,
                      batch_block, seq_len, seq_pad, heads, dim_head,
                      compute_dtype):
    """One grid step: `batch_block` batch elements, full (padded) sequence.

    x_ref    : (M, D)              M = batch_block * seq_pad rows
    wqkv_ref : (D, 3*inner)        Q columns pre-scaled by dim_head**-0.5
    wout_ref : (inner, D)
    bout_ref : (1, D)
    o_ref    : (M, D)
    q/k/v_scr: (heads*batch_block, seq_pad, dim_head)   compute-dtype VMEM scratch
    out_scr  : (M, inner)          compute-dtype VMEM scratch, 'b n (h d)' layout
    """
    inner = heads * dim_head
    Bb, Np, Dh = batch_block, seq_pad, dim_head
    M = Bb * Np
    cdt = compute_dtype

    # ---- QKV projection: full-M MXU matmul, f32 accumulation. ----------------
    xm = x_ref[...].astype(cdt)                                      # (M, D)
    qkv = jnp.dot(xm, wqkv_ref[...].astype(cdt),
                  preferred_element_type=jnp.float32)                # (M, 3*inner) f32
    # (softmax scale already folded into the Q columns by the wrapper)

    # ---- Relayout 'b n (h d)' -> '(h b) n d' once, into VMEM scratch. --------
    # One copy per head (copy-only bodies; each store consumes its slice, so no
    # (N,N)/(N,Dh) matmul temporaries stay live across iterations).  Downstream
    # matmuls then read aligned (Np, Dh) tiles off the leading axis instead of
    # repeatedly feeding 64-lane-misaligned slices into the MXU.
    for h in range(heads):
        qh = qkv[:, 0 * inner + h * Dh: 0 * inner + (h + 1) * Dh]
        kh = qkv[:, 1 * inner + h * Dh: 1 * inner + (h + 1) * Dh]
        vh = qkv[:, 2 * inner + h * Dh: 2 * inner + (h + 1) * Dh]
        q_scr[h * Bb:(h + 1) * Bb] = qh.astype(cdt).reshape(Bb, Np, Dh)
        k_scr[h * Bb:(h + 1) * Bb] = kh.astype(cdt).reshape(Bb, Np, Dh)
        v_scr[h * Bb:(h + 1) * Bb] = vh.astype(cdt).reshape(Bb, Np, Dh)

    q = q_scr[...]                                                   # (H*Bb, Np, Dh)
    k = k_scr[...]
    v = v_scr[...]

    # ---- Scores: ONE batched dot_general over the (head, batch) axis. --------
    dots = jnp.einsum('gnd,gmd->gnm', q, k,
                      preferred_element_type=jnp.float32)            # (H*Bb, Np, Np) f32

    if seq_pad != seq_len:
        # Padded key columns must not receive probability mass.
        key_id = lax.broadcasted_iota(jnp.int32, (Np, Np), 1)        # (Np, Np)
        dots = jnp.where(key_id < seq_len, dots, -1e30)

    # ---- Numerically stable softmax (f32; reductions -> XLU, exp -> EUP). ----
    m = jnp.max(dots, axis=-1, keepdims=True)
    p = jnp.exp(dots - m)
    inv = pl.reciprocal(jnp.sum(p, axis=-1, keepdims=True), approx=True)
    attn = (p * inv).astype(cdt)

    # ---- attn @ V, batched over the same leading axis. -----------------------
    out = jnp.einsum('gnm,gmd->gnd', attn, v,
                     preferred_element_type=jnp.float32)             # (H*Bb, Np, Dh) f32

    # ---- Relayout back '(h b) n d' -> 'b n (h d)' into the (M, inner) scratch.
    for h in range(heads):
        out_scr[:, h * Dh:(h + 1) * Dh] = (
            out[h * Bb:(h + 1) * Bb].reshape(M, Dh).astype(cdt))

    # ---- Output projection + bias (Dropout(p=0) == identity). ----------------
    y = jnp.dot(out_scr[...], wout_ref[...].astype(cdt),
                preferred_element_type=jnp.float32)
    y = y + bout_ref[...].astype(jnp.float32)
    o_ref[...] = y.astype(o_ref.dtype)


def _tpu_vmem_capacity_bytes():
    try:
        cap = getattr(pltpu.get_tpu_info(), "vmem_capacity_bytes", None)
        if cap:
            return int(cap)
    except Exception:
        pass
    return 64 << 20  # conservative default (v7x per-core VMEM)


def _pick_batch_block(B, seq_pad, target_rows):
    """How many batch elements to fuse per grid step (rows = bb * seq_pad)."""
    bb = max(1, min(B, max(1, target_rows // max(seq_pad, 1))))
    if B >= 2:
        # Keep at least two grid steps so both v7x TensorCores get work.
        bb = max(1, min(bb, B // 2))
    while B % bb:      # attention never crosses batch elements -> bb must divide B
        bb -= 1
    return bb


def _grid_invariant_spec(shape, single_buffer):
    index_map = lambda g: (0,) * len(shape)
    if single_buffer:
        try:   # constant index_map => the weights never change; one buffer suffices
            return pl.BlockSpec(shape, index_map, pipeline_mode=pl.Buffered(1))
        except Exception:
            pass
    return pl.BlockSpec(shape, index_map)


def attention_forward(x, w_qkv, w_out, b_out, *, heads, dim_head,
                      batch_block=None, compute_dtype=None):
    """Fused forward pass of the PyTorch `Attention` module (dropout p=0).

    x: (B, N, D); w_qkv: (D, 3*heads*dim_head); w_out: (heads*dim_head, D); b_out: (D,).
    """
    B, N, D = x.shape
    inner = heads * dim_head
    assert w_qkv.shape == (D, 3 * inner), w_qkv.shape
    assert w_out.shape == (inner, D), w_out.shape
    assert b_out.shape == (D,), b_out.shape
    scale = dim_head ** -0.5
    out_dtype = x.dtype
    cdt = jnp.dtype(compute_dtype) if compute_dtype is not None else x.dtype

    # Fold the softmax scale into the Q columns of w_qkv:
    #   x @ (Wq * scale) == (x @ Wq) * scale  -- a D*inner multiply once per call
    # instead of an M*inner multiply per grid step.
    w_qkv = jnp.concatenate(
        [(w_qkv[:, :inner] * scale).astype(w_qkv.dtype), w_qkv[:, inner:]], axis=1)
    if cdt != w_qkv.dtype:
        w_qkv = w_qkv.astype(cdt)
    if cdt != w_out.dtype:
        w_out = w_out.astype(cdt)

    # Pad the sequence up to a multiple of 8 so block shapes stay legal without
    # collapsing the grid (padded keys are masked in-kernel; padded queries are
    # sliced off below).
    Np = ((N + 7) // 8) * 8
    if Np != N:
        x = jnp.pad(x, ((0, 0), (0, Np - N), (0, 0)))

    vmem_cap = _tpu_vmem_capacity_bytes()
    target_rows = 512 if vmem_cap >= (96 << 20) else 256   # v5e/v6e vs v7x sizing
    if batch_block is None:
        Bb = _pick_batch_block(B, Np, target_rows)
    else:
        if B % batch_block != 0:
            raise ValueError(
                f"batch_block={batch_block} must evenly divide batch size B={B}")
        Bb = batch_block
    G = B // Bb
    M = Bb * Np

    x2 = x.reshape(B * Np, D)            # fuse batch into the matmul M dimension
    b2 = b_out.reshape(1, D)

    kernel = functools.partial(
        _attention_kernel, batch_block=Bb, seq_len=N, seq_pad=Np,
        heads=heads, dim_head=dim_head, compute_dtype=cdt)

    itemsize = jnp.dtype(x.dtype).itemsize
    flops = (2 * B * Np * D * (3 * inner)            # QKV projection
             + 4 * heads * B * Np * Np * dim_head    # scores + attn @ V
             + 2 * B * Np * inner * D)               # output projection
    bytes_accessed = (2 * B * Np * D * itemsize
                      + w_qkv.size * jnp.dtype(w_qkv.dtype).itemsize
                      + w_out.size * jnp.dtype(w_out.dtype).itemsize
                      + b_out.size * jnp.dtype(b_out.dtype).itemsize)
    cost = pl.CostEstimate(flops=int(flops),
                           transcendentals=int(heads * B * Np * Np),
                           bytes_accessed=int(bytes_accessed))

    weight_bytes = (w_qkv.size * jnp.dtype(w_qkv.dtype).itemsize
                    + w_out.size * jnp.dtype(w_out.dtype).itemsize)
    single_buffer_weights = weight_bytes > (2 << 20)   # only worth it when big

    # TODO(synk): the `project_out == False` branch (heads == 1 and dim_head == dim,
    # where to_out is nn.Identity) is not specialized; emulate it by passing an
    # identity w_out and a zero b_out.
    out2 = pl.pallas_call(
        kernel,
        out_shape=jax.ShapeDtypeStruct((B * Np, D), out_dtype),
        grid_spec=pltpu.PrefetchScalarGridSpec(
            num_scalar_prefetch=0,
            grid=(G,),
            in_specs=[
                pl.BlockSpec((M, D), lambda g: (g, 0)),                       # x rows
                _grid_invariant_spec((D, 3 * inner), single_buffer_weights),  # w_qkv
                _grid_invariant_spec((inner, D), single_buffer_weights),      # w_out
                _grid_invariant_spec((1, D), False),                          # bias
            ],
            out_specs=pl.BlockSpec((M, D), lambda g: (g, 0)),
            scratch_shapes=[
                pltpu.VMEM((heads * Bb, Np, dim_head), cdt),   # q (head-major)
                pltpu.VMEM((heads * Bb, Np, dim_head), cdt),   # k
                pltpu.VMEM((heads * Bb, Np, dim_head), cdt),   # v
                pltpu.VMEM((M, inner), cdt),                   # 'b n (h d)' output
            ],
        ),
        compiler_params=pltpu.CompilerParams(
            dimension_semantics=("parallel",),
            vmem_limit_bytes=int(vmem_cap * 7 // 8),
        ),
        cost_estimate=cost,
    )(x2, w_qkv, w_out, b2)

    out = out2.reshape(B, Np, D)
    if Np != N:
        out = out[:, :N, :]
    return out


def attention_reference(x, w_qkv, w_out, b_out, *, heads, dim_head):
    """Pure-JAX reference mirroring the PyTorch forward exactly (dropout p=0)."""
    B, N, D = x.shape
    scale = dim_head ** -0.5
    qkv = x @ w_qkv                                                   # (B, N, 3*inner)
    q, k, v = jnp.split(qkv, 3, axis=-1)

    def to_heads(t):  # 'b n (h d) -> b h n d'
        return t.reshape(B, N, heads, dim_head).transpose(0, 2, 1, 3)

    q, k, v = map(to_heads, (q, k, v))
    dots = jnp.einsum("bhnd,bhmd->bhnm", q, k) * scale
    attn = jax.nn.softmax(dots, axis=-1)
    out = jnp.einsum("bhnm,bhmd->bhnd", attn, v)
    out = out.transpose(0, 2, 1, 3).reshape(B, N, heads * dim_head)   # 'b h n d -> b n (h d)'
    return out @ w_out + b_out


if __name__ == "__main__":
    def run_case(B, N, dim, heads, dim_head):
        inner_dim = heads * dim_head
        key = jax.random.PRNGKey(0)
        kx, kqkv, kout, kb = jax.random.split(key, 4)
        x = jax.random.normal(kx, (B, N, dim), dtype=jnp.float32)
        # Deterministic synthetic weights shaped as (in, out) for x @ W.
        w_qkv = jax.random.normal(kqkv, (dim, 3 * inner_dim), jnp.float32) * (dim ** -0.5)
        w_out = jax.random.normal(kout, (inner_dim, dim), jnp.float32) * (inner_dim ** -0.5)
        b_out = jax.random.normal(kb, (dim,), jnp.float32) * 0.02

        y = attention_forward(x, w_qkv, w_out, b_out, heads=heads, dim_head=dim_head)
        y = jax.block_until_ready(y)
        y_ref = attention_reference(x, w_qkv, w_out, b_out, heads=heads, dim_head=dim_head)
        assert y.shape == (B, N, dim), y.shape
        # Everything accumulates in f32; the only approximation is the EUP softmax
        # reciprocal (approx=True), so keep a conservative tolerance across TPU gens.
        assert jnp.allclose(y, y_ref, atol=1e-2, rtol=1e-2), "mismatch vs reference"

    # Aligned sequence length (no padding path).
    run_case(B=2, N=8, dim=32, heads=2, dim_head=16)
    # Sequence length not a multiple of 8 (exercises the pad+mask path, ViT-197 style).
    run_case(B=4, N=7, dim=32, heads=2, dim_head=16)

    print("KERNEL_OK")
</pallas_src>

<mosaic_0001>
module attributes {stable_mosaic.version = 11 : i64} {
  func.func @_attention_kernel(%arg0: i32, %arg1: memref<8x32xf32, #tpu.memory_space<vmem>>, %arg2: memref<32x96xf32, #tpu.memory_space<vmem>>, %arg3: memref<32x32xf32, #tpu.memory_space<vmem>>, %arg4: memref<1x32xf32, #tpu.memory_space<vmem>>, %arg5: memref<8x32xf32, #tpu.memory_space<vmem>>, %arg6: memref<2x8x16xf32, #tpu.memory_space<vmem>>, %arg7: memref<2x8x16xf32, #tpu.memory_space<vmem>>, %arg8: memref<2x8x16xf32, #tpu.memory_space<vmem>>, %arg9: memref<8x32xf32, #tpu.memory_space<vmem>>) attributes {dimension_semantics = [#tpu.dimension_semantics<parallel>], iteration_bounds = array<i64: 2>, scalar_prefetch = 0 : i64, scratch_operands = 4 : i64, tpu.core_type = #tpu.core_type<tc>, window_params = [{transform_indices = @transform_0, window_bounds = array<i64: 8, 32>}, {pipeline_mode = #tpu.pipeline_mode<synchronous>, transform_indices = @transform_1, window_bounds = array<i64: 32, 96>}, {pipeline_mode = #tpu.pipeline_mode<synchronous>, transform_indices = @transform_2, window_bounds = array<i64: 32, 32>}, {pipeline_mode = #tpu.pipeline_mode<synchronous>, transform_indices = @transform_3, window_bounds = array<i64: 1, 32>}, {transform_indices = @transform_4, window_bounds = array<i64: 8, 32>}]} {
    %c0 = arith.constant 0 : index
    %c0_0 = arith.constant 0 : index
    %0 = vector.load %arg1[%c0, %c0_0] : memref<8x32xf32, #tpu.memory_space<vmem>>, vector<8x32xf32>
    %c0_1 = arith.constant 0 : index
    %c0_2 = arith.constant 0 : index
    %1 = vector.load %arg2[%c0_1, %c0_2] : memref<32x96xf32, #tpu.memory_space<vmem>>, vector<32x96xf32>
    %cst = arith.constant dense<0.000000e+00> : vector<8x96xf32>
    %2 = tpu.matmul %0, %1, %cst {dimension_numbers = #tpu.dot_dimension_numbers<[1], [0], [0], [1], [0, 0, 1, 1], [], []>} : vector<8x32xf32>, vector<32x96xf32>, vector<8x96xf32> -> vector<8x96xf32>
    %3 = vector.extract_strided_slice %2 {offsets = [0, 0], sizes = [8, 16], strides = [1, 1]} : vector<8x96xf32> to vector<8x16xf32>
    %4 = vector.extract_strided_slice %2 {offsets = [0, 32], sizes = [8, 16], strides = [1, 1]} : vector<8x96xf32> to vector<8x16xf32>
    %5 = vector.extract_strided_slice %2 {offsets = [0, 64], sizes = [8, 16], strides = [1, 1]} : vector<8x96xf32> to vector<8x16xf32>
    %6 = vector.shape_cast %3 : vector<8x16xf32> to vector<1x8x16xf32>
    %c0_3 = arith.constant 0 : index
    %c0_4 = arith.constant 0 : index
    %c0_5 = arith.constant 0 : index
    %7 = vector.load %arg6[%c0_3, %c0_4, %c0_5] : memref<2x8x16xf32, #tpu.memory_space<vmem>>, vector<1x8x16xf32>
    tpu.vector_store %arg6[%c0_3, %c0_4, %c0_5], %6 {strides = array<i32>} : memref<2x8x16xf32, #tpu.memory_space<vmem>>, vector<1x8x16xf32>,
    %8 = vector.shape_cast %4 : vector<8x16xf32> to vector<1x8x16xf32>
    %c0_6 = arith.constant 0 : index
    %c0_7 = arith.constant 0 : index
    %c0_8 = arith.constant 0 : index
    %9 = vector.load %arg7[%c0_6, %c0_7, %c0_8] : memref<2x8x16xf32, #tpu.memory_space<vmem>>, vector<1x8x16xf32>
    tpu.vector_store %arg7[%c0_6, %c0_7, %c0_8], %8 {strides = array<i32>} : memref<2x8x16xf32, #tpu.memory_space<vmem>>, vector<1x8x16xf32>,
    %10 = vector.shape_cast %5 : vector<8x16xf32> to vector<1x8x16xf32>
    %c0_9 = arith.constant 0 : index
    %c0_10 = arith.constant 0 : index
    %c0_11 = arith.constant 0 : index
    %11 = vector.load %arg8[%c0_9, %c0_10, %c0_11] : memref<2x8x16xf32, #tpu.memory_space<vmem>>, vector<1x8x16xf32>
    tpu.vector_store %arg8[%c0_9, %c0_10, %c0_11], %10 {strides = array<i32>} : memref<2x8x16xf32, #tpu.memory_space<vmem>>, vector<1x8x16xf32>,
    %12 = vector.extract_strided_slice %2 {offsets = [0, 16], sizes = [8, 16], strides = [1, 1]} : vector<8x96xf32> to vector<8x16xf32>
    %13 = vector.extract_strided_slice %2 {offsets = [0, 48], sizes = [8, 16], strides = [1, 1]} : vector<8x96xf32> to vector<8x16xf32>
    %14 = vector.extract_strided_slice %2 {offsets = [0, 80], sizes = [8, 16], strides = [1, 1]} : vector<8x96xf32> to vector<8x16xf32>
    %15 = vector.shape_cast %12 : vector<8x16xf32> to vector<1x8x16xf32>
    %c1 = arith.constant 1 : index
    %c0_12 = arith.constant 0 : index
    %c0_13 = arith.constant 0 : index
    %16 = vector.load %arg6[%c1, %c0_12, %c0_13] : memref<2x8x16xf32, #tpu.memory_space<vmem>>, vector<1x8x16xf32>
    tpu.vector_store %arg6[%c1, %c0_12, %c0_13], %15 {strides = array<i32>} : memref<2x8x16xf32, #tpu.memory_space<vmem>>, vector<1x8x16xf32>,
    %17 = vector.shape_cast %13 : vector<8x16xf32> to vector<1x8x16xf32>
    %c1_14 = arith.constant 1 : index
    %c0_15 = arith.constant 0 : index
    %c0_16 = arith.constant 0 : index
    %18 = vector.load %arg7[%c1_14, %c0_15, %c0_16] : memref<2x8x16xf32, #tpu.memory_space<vmem>>, vector<1x8x16xf32>
    tpu.vector_store %arg7[%c1_14, %c0_15, %c0_16], %17 {strides = array<i32>} : memref<2x8x16xf32, #tpu.memory_space<vmem>>, vector<1x8x16xf32>,
    %19 = vector.shape_cast %14 : vector<8x16xf32> to vector<1x8x16xf32>
    %c1_17 = arith.constant 1 : index
    %c0_18 = arith.constant 0 : index
    %c0_19 = arith.constant 0 : index
    %20 = vector.load %arg8[%c1_17, %c0_18, %c0_19] : memref<2x8x16xf32, #tpu.memory_space<vmem>>, vector<1x8x16xf32>
    tpu.vector_store %arg8[%c1_17, %c0_18, %c0_19], %19 {strides = array<i32>} : memref<2x8x16xf32, #tpu.memory_space<vmem>>, vector<1x8x16xf32>,
    %c0_20 = arith.constant 0 : index
    %c0_21 = arith.constant 0 : index
    %c0_22 = arith.constant 0 : index
    %21 = vector.load %arg6[%c0_20, %c0_21, %c0_22] : memref<2x8x16xf32, #tpu.memory_space<vmem>>, vector<2x8x16xf32>
    %c0_23 = arith.constant 0 : index
    %c0_24 = arith.constant 0 : index
    %c0_25 = arith.constant 0 : index
    %22 = vector.load %arg7[%c0_23, %c0_24, %c0_25] : memref<2x8x16xf32, #tpu.memory_space<vmem>>, vector<2x8x16xf32>
    %c0_26 = arith.constant 0 : index
    %c0_27 = arith.constant 0 : index
    %c0_28 = arith.constant 0 : index
    %23 = vector.load %arg8[%c0_26, %c0_27, %c0_28] : memref<2x8x16xf32, #tpu.memory_space<vmem>>, vector<2x8x16xf32>
    "tpu.trace_start"() <{level = 10 : i32, message = "gnd,gmd->gnm"}> : () -> ()
    %cst_29 = arith.constant dense<0.000000e+00> : vector<2x8x8xf32>
    %24 = tpu.matmul %21, %22, %cst_29 {dimension_numbers = #tpu.dot_dimension_numbers<[2], [2], [1], [1], [0, 0, 0, 1, 1, 1], [0], [0]>} : vector<2x8x16xf32>, vector<2x8x16xf32>, vector<2x8x8xf32> -> vector<2x8x8xf32>
    "tpu.trace_stop"() : () -> ()
    %cst_30 = arith.constant dense<0xFF800000> : vector<2x8xf32>
    %25 = vector.multi_reduction <maximumf>, %24, %cst_30 [2] : vector<2x8x8xf32> to vector<2x8xf32>
    %26 = vector.shape_cast %25 : vector<2x8xf32> to vector<2x8x1xf32>
    %27 = vector.broadcast %26 : vector<2x8x1xf32> to vector<2x8x8xf32>
    %28 = arith.subf %24, %27 : vector<2x8x8xf32>
    %29 = math.exp %28 : vector<2x8x8xf32>
    %cst_31 = arith.constant dense<0.000000e+00> : vector<2x8xf32>
    %30 = vector.multi_reduction <add>, %29, %cst_31 [2] : vector<2x8x8xf32> to vector<2x8xf32>
    %31 = vector.shape_cast %30 : vector<2x8xf32> to vector<2x8x1xf32>
    %32 = tpu.reciprocal %31 {approx = true} : vector<2x8x1xf32> -> vector<2x8x1xf32>
    %33 = vector.broadcast %32 : vector<2x8x1xf32> to vector<2x8x8xf32>
    %34 = arith.mulf %29, %33 : vector<2x8x8xf32>
    "tpu.trace_start"() <{level = 10 : i32, message = "gnm,gmd->gnd"}> : () -> ()
    %cst_32 = arith.constant dense<0.000000e+00> : vector<2x8x16xf32>
    %35 = tpu.matmul %34, %23, %cst_32 {dimension_numbers = #tpu.dot_dimension_numbers<[2], [1], [1], [2], [0, 0, 0, 1, 1, 2], [0], [0]>} : vector<2x8x8xf32>, vector<2x8x16xf32>, vector<2x8x16xf32> -> vector<2x8x16xf32>
    "tpu.trace_stop"() : () -> ()
    %36 = vector.extract_strided_slice %35 {offsets = [0, 0, 0], sizes = [1, 8, 16], strides = [1, 1, 1]} : vector<2x8x16xf32> to vector<1x8x16xf32>
    %37 = vector.shape_cast %36 : vector<1x8x16xf32> to vector<8x16xf32>
    %c0_33 = arith.constant 0 : index
    %c0_34 = arith.constant 0 : index
    %38 = vector.load %arg9[%c0_33, %c0_34] : memref<8x32xf32, #tpu.memory_space<vmem>>, vector<8x16xf32>
    tpu.vector_store %arg9[%c0_33, %c0_34], %37 {strides = array<i32>} : memref<8x32xf32, #tpu.memory_space<vmem>>, vector<8x16xf32>,
    %39 = vector.extract_strided_slice %35 {offsets = [1, 0, 0], sizes = [1, 8, 16], strides = [1, 1, 1]} : vector<2x8x16xf32> to vector<1x8x16xf32>
    %40 = vector.shape_cast %39 : vector<1x8x16xf32> to vector<8x16xf32>
    %c0_35 = arith.constant 0 : index
    %c16 = arith.constant 16 : index
    %41 = vector.load %arg9[%c0_35, %c16] : memref<8x32xf32, #tpu.memory_space<vmem>>, vector<8x16xf32>
    tpu.vector_store %arg9[%c0_35, %c16], %40 {strides = array<i32>} : memref<8x32xf32, #tpu.memory_space<vmem>>, vector<8x16xf32>,
    %c0_36 = arith.constant 0 : index
    %c0_37 = arith.constant 0 : index
    %42 = vector.load %arg9[%c0_36, %c0_37] : memref<8x32xf32, #tpu.memory_space<vmem>>, vector<8x32xf32>
    %c0_38 = arith.constant 0 : index
    %c0_39 = arith.constant 0 : index
    %43 = vector.load %arg3[%c0_38, %c0_39] : memref<32x32xf32, #tpu.memory_space<vmem>>, vector<32x32xf32>
    %cst_40 = arith.constant dense<0.000000e+00> : vector<8x32xf32>
    %44 = tpu.matmul %42, %43, %cst_40 {dimension_numbers = #tpu.dot_dimension_numbers<[1], [0], [0], [1], [0, 0, 1, 1], [], []>} : vector<8x32xf32>, vector<32x32xf32>, vector<8x32xf32> -> vector<8x32xf32>
    %c0_41 = arith.constant 0 : index
    %c0_42 = arith.constant 0 : index
    %45 = vector.load %arg4[%c0_41, %c0_42] : memref<1x32xf32, #tpu.memory_space<vmem>>, vector<1x32xf32>
    %46 = vector.broadcast %45 : vector<1x32xf32> to vector<8x32xf32>
    %47 = arith.addf %44, %46 : vector<8x32xf32>
    %c0_43 = arith.constant 0 : index
    %c0_44 = arith.constant 0 : index
    %48 = vector.load %arg5[%c0_43, %c0_44] : memref<8x32xf32, #tpu.memory_space<vmem>>, vector<8x32xf32>
    tpu.vector_store %arg5[%c0_43, %c0_44], %47 {strides = array<i32>} : memref<8x32xf32, #tpu.memory_space<vmem>>, vector<8x32xf32>,
    return
  }
  func.func @transform_0(%arg0: i32) -> (i32, i32) {
    %c0_i32 = arith.constant 0 : i32
    %c0_i32_0 = arith.constant 0 : i32
    return %arg0, %c0_i32 : i32, i32
  }
  func.func @transform_1(%arg0: i32) -> (i32, i32) {
    %c0_i32 = arith.constant 0 : i32
    %c0_i32_0 = arith.constant 0 : i32
    %c0_i32_1 = arith.constant 0 : i32
    return %c0_i32, %c0_i32_0 : i32, i32
  }
  func.func @transform_2(%arg0: i32) -> (i32, i32) {
    %c0_i32 = arith.constant 0 : i32
    %c0_i32_0 = arith.constant 0 : i32
    %c0_i32_1 = arith.constant 0 : i32
    return %c0_i32, %c0_i32_0 : i32, i32
  }
  func.func @transform_3(%arg0: i32) -> (i32, i32) {
    %c0_i32 = arith.constant 0 : i32
    %c0_i32_0 = arith.constant 0 : i32
    %c0_i32_1 = arith.constant 0 : i32
    return %c0_i32, %c0_i32_0 : i32, i32
  }
  func.func @transform_4(%arg0: i32) -> (i32, i32) {
    %c0_i32 = arith.constant 0 : i32
    %c0_i32_0 = arith.constant 0 : i32
    return %arg0, %c0_i32 : i32, i32
  }
}

</mosaic_0001>

<bundles_post_ra>
// kernel: tpu_custom_call.1
= control target key start
LH: loop header
LB: loop body
LE: loop exit
PB: predicated region body
PF: predicated region fallthrough
CT: control target
= control target key end

     0   :  { %9 = vsyncpa [#allocation7], 0  ;;  %s1527_s0 = inlined_call_operand.hbm [shape: f32[16,32], index: 0, kind: input, shape index: {}]   ;;  %s1528_s1 = inlined_call_operand.hbm [shape: f32[32,96], index: 1, kind: input, shape index: {}]   ;;  %s1529_s2 = inlined_call_operand.hbm [shape: f32[32,32], index: 2, kind: input, shape index: {}]   ;;  %s1530_s3 = inlined_call_operand.vmem [shape: f32[1,32], index: 3, kind: input, shape index: {}]   ;;  %s1531_s4 = inlined_call_operand.hbm [shape: f32[16,32], index: 4, kind: output, shape index: {}]  }
   0x1   :  { %11 = vsyncpa [#allocation7 + $0x1], 0 }
   0x2   :  { %12 = vsyncpa [#allocation10], 0 }
   0x3   :  { %13 = vsyncpa [#allocation8], 0 }
   0x4   :  { %15 = vsyncpa [#allocation8 + $0x1], 0  ;;  %s1251_s15 = smov 0   ;;  %s1253_s16 = smov 0  }
   0x5   :  { %s1255_s17 = smov 0   ;;  %s1257_s18 = smov 0  }
   0x6 LB: > { %s1272_s19 = sadd.s32 4294967295, %s1209_s18   ;;  %s870_s20 = sadd.s32 4294967294, %s1209_s18   ;;  %s1209_s18 = sphi %s1257_s18, %s1551_s18   ;;  %s1205_s17 = sphi %s1255_s17, %s1550_s17   ;;  %s1201_s16 = sphi %s1253_s16, %s1549_s16   ;;  %s1197_s15 = sphi %s1251_s15, %s1548_s15  }
   0x7   : > { %p41_p0 = scmp.ne.s32.totalorder %s1201_s16, %s1197_s15  ;;  %p1532_p1 = scmp.eq.s32.totalorder %s1272_s19, 0 }
   0x8   : > { %p134_p3 = scmp.eq.s32.totalorder %s870_s20, 1  ;;  %p871_p5 = scmp.ge.s32.totalorder %s1209_s18, 1 }
   0x9   : > { %p1281_p4 = por %p1532_p1, %p41_p0  ;;  %p141_p7 = scmp.lt.s32.totalorder %s1209_s18, 3 }
   0xa   : > { %p1286_p6 = por %p134_p3, %p41_p0  ;;  %s1211_s24 = smov [#allocation9]  }
   0xb   : > { %s1535_s21 = scalar_select %p1281_p4, 1, 0 }
   0xc   : > { %s1536_s22 = scalar_select %p1286_p6, 1, 0 }
   0xd   : > { %p1291_p8 = pnand %p871_p5, %p141_p7  ;;  %s153_s25 = sshll.u32 %s1211_s24, 4  ;;  %s1295_s25 = int_to_ptr.vmem [resolvable:$true] %s153_s25 }
   0xe   : > { %s1212_s27 = smov [#allocation11]   ;;  %s1053_s5 = scalar_lea.hbm %s1528_s1, 512 }
   0xf   : > { %p979_p9 = pneg %p1291_p8  ;;  %s166_s28 = sshll.u32 %s1212_s27, 4  ;;  %s1306_s28 = int_to_ptr.vmem [resolvable:$true] %s166_s28 }
  0x10   : > { %p1054_p12 = scmp.ne.s32.totalorder %s1528_s1, %s1053_s5  ;;  %p1060_p5 = scmp.lt.u32.totalorder %s1053_s5, %s1528_s1 }
  0x11   : > { %p1302_p11 = pnand %p979_p9, %p1532_p1 }
  0x13   : > { %p1055_p13 = pneg %p1302_p11 }
  0x15   : > { %p1056_p0 = pnand %p1055_p13, %p1054_p12 }
  0x17   : > { %p1057_p3 = pneg %p1056_p0 }
  0x19   : > { %p1062_p7 = pnand %p1060_p5, %p1057_p3 }
  0x1b   : > { %1065 = shalt.err (!%p1062_p7)
}
  0x1c   : > { %s1066_s10 = scalar_lea.vmem %s1295_s25, 512  ;;  %p1074_p2 = scmp.lt.s32.totalorder %s1295_s25, %s1295_s25 }
  0x1d   : > { %p1067_p9 = scmp.ne.s32.totalorder %s1295_s25, %s1066_s10  ;;  %p1075_p12 = scmp.lt.s32.totalorder %s1066_s10, %s1066_s10 }
  0x1f   : > { %p1069_p10 = pnand %p1067_p9, %p1055_p13  ;;  %p1076_p0 = por %p1075_p12, %p1074_p2 }
  0x21   : > { %p1070_p1 = pneg %p1069_p10 }
  0x23   : > { %p1077_p6 = pnand %p1076_p0, %p1070_p1 }
  0x25   : > { %1080 = shalt.err (!%p1077_p6)
}
  0x26   : > { %s1213_s11 = smov 128   ;;  %s1214_s12 = smov 8  }
  0x27   : > { %982 = dma.hbm_to_vmem [thread:$0]  (!%p1302_p11), %s1528_s1, 512, %s1295_s25, [#allocation10], %s1213_s11, %s1213_s11, %s1214_s12  }
  0x28   : > { %s1081_s27 = scalar_lea.hbm %s1529_s2, 512 }
  0x29   : > { %p1082_p2 = scmp.ne.s32.totalorder %s1529_s2, %s1081_s27  ;;  %p1088_p10 = scmp.lt.u32.totalorder %s1081_s27, %s1529_s2 }
  0x2b   : > { %p1084_p1 = pnand %p1082_p2, %p1055_p13 }
  0x2d   : > { %p1085_p6 = pneg %p1084_p1 }
  0x2f   : > { %p1090_p3 = pnand %p1088_p10, %p1085_p6 }
  0x31   : > { %1093 = shalt.err (!%p1090_p3)
}
  0x32   : > { %s1094_s25 = scalar_lea.vmem %s1306_s28, 512  ;;  %p1102_p12 = scmp.lt.s32.totalorder %s1306_s28, %s1306_s28 }
  0x33   : > { %p1095_p5 = scmp.ne.s32.totalorder %s1306_s28, %s1094_s25  ;;  %p1103_p0 = scmp.lt.s32.totalorder %s1094_s25, %s1094_s25 }
  0x35   : > { %p1097_p7 = pnand %p1095_p5, %p1055_p13  ;;  %p1104_p2 = por %p1103_p0, %p1102_p12 }
  0x37   : > { %p1098_p9 = pneg %p1097_p7 }
  0x39   : > { %p1105_p1 = pnand %p1104_p2, %p1098_p9 }
  0x3b   : > { %1108 = shalt.err (!%p1105_p1)
}
  0x3c   : > { %985 = dma.hbm_to_vmem [thread:$0]  (!%p1302_p11), %s1529_s2, 512, %s1306_s28, [#allocation10], %s1213_s11, %s1213_s11, %s1214_s12  }
  0x3d   : > { %s1361_s9 = sadd.s32 1, %s1209_s18   ;;  %s28_s26 = sadd.s32 1, %s1205_s17 }
  0x3e   : > { %s25_s10 = ssub.s32 %s1209_s18, %s1361_s9  ;;  %p35_p13 = scmp.ne.s32.totalorder %s1205_s17, %s1201_s16 }
  0x3f   : > { %p26_p6 = scmp.eq.s32.totalorder %s25_s10, 0  ;;  %p36_p10 = scmp.eq.s32.totalorder %s1209_s18, 0 }
  0x40   : > { %p1539_p3 = scmp.eq.s32.totalorder %s1272_s19, 1  ;;  %p996_p7 = scmp.lt.s32.totalorder %s1209_s18, 2 }
  0x41   : > { %s1377_s14 = scalar_select %p26_p6, %s1205_s17, %s28_s26  }
  0x42   : > { %p1371_p5 = por %p1539_p3, %p35_p13  ;;  %p37_p9 = por %p36_p10, %p35_p13 }
  0x43   : > { %s183_s20 = sand.u32 1, %s1205_s17   ;;  %s876_s28 = sshll.u32 %s1209_s18, 7 }
  0x44   : > { %s1540_s13 = scalar_select %p1371_p5, 1, 0 }
  0x45   : > { %s875_s24 = sshll.u32 %s183_s20, 3  ;;  %s1384_s27 = scalar_lea.hbm %s1527_s0, %s876_s28 }
  0x46   : > { %s187_s29 = scalar_lea.vmem [#allocation6], %s875_s24  ;;  %p1388_p11 = pnand %p996_p7, %p37_p9 }
  0x47   : > { %s194_s30 = sshll.u32 %s187_s29, 4  ;;  %s184_s6 = scalar_lea.sflag [#allocation7], %s183_s20  ;;  %s1386_s30 = int_to_ptr.vmem [resolvable:$true] %s194_s30 }
  0x48   : > { %s1109_s25 = scalar_lea.hbm %s1384_s27, 128  ;;  %p1111_p0 = pneg %p1388_p11 }
  0x49   : > { %p1110_p12 = scmp.ne.s32.totalorder %s1384_s27, %s1109_s25  ;;  %s1114_s26 = scalar_lea.hbm %s1527_s0, 256 }
  0x4a   : > { %p1115_p13 = scmp.lt.u32.totalorder %s1384_s27, %s1527_s0  ;;  %p1116_p6 = scmp.lt.u32.totalorder %s1114_s26, %s1109_s25 }
  0x4b   : > { %p1112_p2 = pnand %p1111_p0, %p1110_p12  ;;  %p1118_p3 = scmp.lt.u32.totalorder %s1109_s25, %s1384_s27 }
  0x4c   : > { %p1117_p10 = por %p1116_p6, %p1115_p13 }
  0x4d   : > { %p1113_p1 = pneg %p1112_p2 }
  0x4e   : > { %p1119_p7 = por %p1118_p3, %p1117_p10 }
  0x50   : > { %p1120_p9 = pnand %p1119_p7, %p1113_p1 }
  0x52   : > { %1123 = shalt.err (!%p1120_p9)
}
  0x53   : > { %s1124_s20 = scalar_lea.vmem %s1386_s30, 128  ;;  %s1215_s28 = smov [#allocation6]  }
  0x54   : > { %p1125_p12 = scmp.ne.s32.totalorder %s1386_s30, %s1124_s20  ;;  %s1129_s11 = sshll.u32 %s1215_s28, 4  ;;  %s1130_s11 = int_to_ptr.vmem [resolvable:$false] %s1129_s11 }
  0x55   : > { %s1131_s12 = scalar_lea.vmem %s1130_s11, 256  ;;  %p1132_p4 = scmp.lt.s32.totalorder %s1386_s30, %s1130_s11 }
  0x56   : > { %p1127_p2 = pnand %p1125_p12, %p1111_p0  ;;  %p1133_p13 = scmp.lt.s32.totalorder %s1131_s12, %s1124_s20 }
  0x58   : > { %p1128_p5 = pneg %p1127_p2  ;;  %p1134_p6 = por %p1133_p13, %p1132_p4 }
  0x5a   : > { %p1135_p10 = pnand %p1134_p6, %p1128_p5 }
  0x5c   : > { %1138 = shalt.err (!%p1135_p10)
}
  0x5d   : > { %989 = dma.hbm_to_vmem [thread:$0]  (!%p1388_p11), %s1384_s27, 128, %s1386_s30, %s184_s6  }
  0x5e   : > { %203 = sbr.rel (%p1291_p8) target bundleno = 1546 (0x60a), region = 36  ;;  %s1420_s29 = sand.u32 (!%p1291_p8), 1, %s1201_s16  }
  0x5f   : > { %s878_s25 = sshll.u32 (!%p1291_p8), %s1420_s29, 3  ;;  %s206_s7 = scalar_lea.sflag (!%p1291_p8), [#allocation7], %s1420_s29 }
  0x60   : > { %s209_s8 = scalar_lea.vmem (!%p1291_p8), [#allocation6], %s878_s25  ;;  %p1542_p4 = scmp.ne.s32.totalorder (!%p1291_p8), %s1535_s21, 0 }
  0x65   : > { %1184 = dma.done.wait (%p1542_p4), %s206_s7, 128  }
  0x66   : > { %1186 = vsyncadd (%p1542_p4), %s206_s7, 4294967168  ;;  %p1543_p5 = scmp.eq.s32.totalorder %s1272_s19, 0 }
  0x68   : > { %1188 = dma.done.wait (%p1543_p5), [#allocation10], 1024   ;;  %p1544_p8 = pmov %p1543_p5 }
  0x69   : > { %v1216_v0 = vmov 0.0|0.0   ;;  %vm1217_vm0 = vmmov 0   ;;  %v1218_v1 = vmov 0.0   ;;  %v243_v2 = vld [vmem:[#allocation9] sm:$0xff]  ;;  %v244_v3 = vld [vmem:[#allocation9 + $0x8] sm:$0xff]  ;;  %v245_v4 = vld [vmem:[#allocation9 + $0x10] sm:$0xff] }
  0x6a   : > { %1190 = vsyncadd (%p1544_p8), [#allocation10], 4294966272  ;;  %955 = vmatprep.subr.bf16.mxu0 %v1216_v0  ;;  %921 = vmatprep.mubr.msk.f32.mxu0 %vm1217_vm0, %v1218_v1  ;;  %v956_v5 = vpack.c.bf16 %v244_v3, %v243_v2  ;;  %v246_v6 = vld [vmem:[#allocation9 + $0x18] sm:$0xff]  ;;  %vm247_vm1 = vcmask 261120   ;;  %vm321_vm2 = vcmask 130048   ;;  %s1219_s21 = smov 112  }
  0x6b   : > { %924 = vmatprep.subr.mxu1 %v1218_v1  ;;  %926 = vmatprep.mubr.msk.f32.mxu1 %vm1217_vm0, %v1218_v1  ;;  %v959_v7 = vpack.c.bf16 %v246_v6, %v245_v4  ;;  %v242_v8 = vld [vmem:[%s209_s8] sm:$0xff]  ;;  %s1220_s23 = smov 96   ;;  %s1221_s27 = smov 80   ;;  %vm505_vm3 = vcmask 64512   ;;  %v682_v44 = vld [vmem:[#allocation11] sm:$0xff]  ;;  %v683_v45 = vld [vmem:[#allocation11 + $0x8] sm:$0xff] }
  0x6c   : > { %957 = vmatpush3.bf16.msra.mxu0 %v956_v5  ;;  %s1222_s30 = smov 48   ;;  %s1223_s5 = smov 64   ;;  %v962_v46 = vpack.c.bf16 %v683_v45, %v682_v44  ;;  %v684_v47 = vld [vmem:[#allocation11 + $0x10] sm:$0xff]  ;;  %v685_v48 = vld [vmem:[#allocation11 + $0x18] sm:$0xff]  ;;  %vm679_vm4 = vcmask 261248  }
  0x6d   : > { %958 = vmatprep.subr.bf16.mxu0 %v1216_v0  ;;  %v965_v49 = vpack.c.bf16 %v685_v48, %v684_v47  ;;  %s1224_s6 = smov 16   ;;  %v889_v56 = vld [vmem:[%s1530_s3] ss:$0 sm:$0xff]  ;;  %s892_s24 = sshll.u32 %s1272_s19, 7 }
  0x6e   : > { %s241_s20 = scalar_lea.vmem [#allocation12], %s878_s25  ;;  %s1482_s7 = scalar_lea.hbm %s1531_s4, %s892_s24 }
  0x6f   : > { %s781_s28 = sshll.u32 %s241_s20, 4  ;;  %s768_s8 = scalar_lea.sflag [#allocation8], %s1420_s29  ;;  %s1484_s28 = int_to_ptr.vmem [resolvable:$true] %s781_s28 }
  0x70   : > { %960 = vmatpush3.bf16.msra.mxu0 %v959_v7  ;;  %s1139_s19 = scalar_lea.vmem %s1484_s28, 128  ;;  %p1545_p0 = scmp.ne.s32.totalorder %s1540_s13, 0 }
  0x71   : > { %961 = vmatprep.subr.bf16.mxu0 %v1216_v0  ;;  %p1140_p11 = scmp.ne.s32.totalorder %s1484_s28, %s1139_s19  ;;  %s1225_s25 = smov [#allocation12]  }
  0x73   : > { %922 = vmatmul.mubr.msk.f32.vlgmr.msra.gmra.mrb[0].mxu0 %vm247_vm1, %v242_v8  ;;  %p1141_p1 = pnand %p1140_p11, %p1545_p0 }
  0x74   : > { %952 = vmatprep.mubr.msk.f32.mxu0 %vm1217_vm0, %v1218_v1  ;;  %963 = vmatpush3.bf16.msra.mxu0 %v962_v46 }
  0x75   : > { %964 = vmatprep.subr.bf16.mxu0 %v1216_v0  ;;  %p1142_p3 = pneg %p1141_p1 }
  0x78   : > { %966 = vmatpush3.bf16.msra.mxu0 %v965_v49 }
 0x146   : > { %v317_v9 = vpop.f32.mrb[0].mxu0 }
 0x147   : > { %322 = vst.msk [vmem:[#allocation2] sm:$0xff] %vm321_vm2, %v317_v9  ;;  %332 = vrot.lane.b32.xlu1 %v317_v9, %s1219_s21  ;;  %324 = vrot.lane.b32.xlu0 %v317_v9, %s1220_s23  ;;  %v923_v10 = vpop.f32.mrb[1].mxu0  ;;  %s1143_s21 = sshll.u32 %s1225_s25, 4  ;;  %s1144_s21 = int_to_ptr.vmem [resolvable:$false] %s1143_s21 }
 0x148   : > { %s1145_s23 = scalar_lea.vmem %s1144_s21, 256  ;;  %p1146_p7 = scmp.lt.s32.totalorder %s1484_s28, %s1144_s21 }
 0x149   : > { %p1147_p9 = scmp.lt.s32.totalorder %s1145_s23, %s1139_s19 }
 0x14b   : > { %337 = vrot.lane.b32.xlu0 %v317_v9, %s1221_s27  ;;  %p1148_p12 = por %p1147_p9, %p1146_p7 }
 0x14d   : > { %p1149_p2 = pnand %p1148_p12, %p1142_p3 }
 0x14e   : > { %v347_v15 = vld [vmem:[#allocation2] sm:$0xff] }
 0x1b9   : > { %v333_v11 = vpop.permute.xlu1 %332  ;;  %v325_v12 = vpop.permute.xlu0 %324 }
 0x1ba   : > { %336 = vst.msk [vmem:[#allocation2 + $0x8] sm:$0xff] %vm321_vm2, %v333_v11  ;;  %327 = vst.msk [vmem:[#allocation3] sm:$0xff] %vm321_vm2, %v325_v12 }
 0x1bd   : > { %v338_v13 = vpop.permute.xlu0 %337 }
 0x1be   : > { %341 = vst.msk [vmem:[#allocation3 + $0x8] sm:$0xff] %vm321_vm2, %v338_v13 }
 0x1c1   : > { %v349_v14 = vld [vmem:[#allocation3] sm:$0xff]  ;;  %v348_v17 = vld [vmem:[#allocation2 + $0x8] sm:$0xff] }
 0x1c2   : > { %925 = vmatpush3.xpose.msk.msra.mxu1 %vm321_vm2, %v349_v14 }
 0x1c3   : > { %929 = vmatprep.subr.mxu1 %v1218_v1 }
 0x1c5   : > { %927 = vmatmul.mubr.msk.f32.vlgmr.msra.gmra.mrb[0].mxu1 %vm321_vm2, %v347_v15  ;;  %v350_v16 = vld [vmem:[#allocation3 + $0x8] sm:$0xff] }
 0x1c6   : > { %930 = vmatpush3.xpose.msk.msra.mxu1 %vm321_vm2, %v350_v16  ;;  %931 = vmatprep.mubr.msk.f32.mxu1 %vm1217_vm0, %v1218_v1 }
 0x1c7   : > { %934 = vmatprep.subr.mxu1 %v1218_v1 }
 0x1c9   : > { %932 = vmatmul.mubr.msk.f32.vlgmr.msra.gmra.mrb[2].mxu1 %vm321_vm2, %v348_v17 }
 0x1ca   : > { %936 = vmatprep.mubr.msk.f32.mxu1 %vm1217_vm0, %v1218_v1 }
 0x298   : > { %v425_v18 = vpop.f32.mrb[0].mxu1 }
 0x299   : > { %v928_v19 = vpop.f32.mrb[1].mxu1  ;;  %v506_v20 = vsel %vm505_vm3, %v425_v18, -inf }
 0x29a   : > { %507 = vmax.xlane.f32.xlu1 %v506_v20 }
 0x29c   : > { %v501_v21 = vpop.f32.mrb[2].mxu1 }
 0x29d   : > { %v933_v22 = vpop.f32.mrb[3].mxu1  ;;  %v509_v23 = vsel %vm505_vm3, %v501_v21, -inf }
 0x29e   : > { %510 = vmax.xlane.f32.xlu0 %v509_v23 }
 0x327   : > { %v508_v24 = vpop.xlane.xlu1 %507 }
 0x328   : > { %v512_v25 = vsub.f32 %v425_v18, %v508_v24 }
 0x32a   : > { %v514_v26 = vmul.f32 1.442695, %v512_v25 }
 0x32b   : > { %v511_v27 = vpop.xlane.xlu0 %510 }
 0x32c   : > { %1045 = vpow2.f32 %v514_v26  ;;  %v513_v28 = vsub.f32 %v501_v21, %v511_v27 }
 0x32e   : > { %v516_v29 = vmul.f32 1.442695, %v513_v28 }
 0x330   : > { %1047 = vpow2.f32 %v516_v29 }
 0x336   : > { %v1046_v30 = vpop.eup %1045 }
 0x337   : > { %v518_v31 = vsel %vm505_vm3, %v1046_v30, 0.0 }
 0x338   : > { %519 = vadd.xlane.f32.xlu0 %v518_v31 }
 0x33a   : > { %v1048_v32 = vpop.eup %1047 }
 0x33b   : > { %v521_v33 = vsel %vm505_vm3, %v1048_v32, 0.0 }
 0x33c   : > { %522 = vadd.xlane.f32.xlu1 %v521_v33 }
 0x34d   : > { %342 = vrot.lane.b32.xlu1 %v317_v9, %s1222_s30 }
 0x34e   : > { %328 = vrot.lane.b32.xlu0 %v317_v9, %s1223_s5 }
 0x3c5   : > { %v520_v34 = vpop.xlane.xlu0 %519 }
 0x3c6   : > { %1049 = vrcp.f32 %v520_v34 }
 0x3c9   : > { %v523_v35 = vpop.xlane.xlu1 %522  ;;  %v329_v36 = vpop.permute.xlu0 %328 }
 0x3ca   : > { %1051 = vrcp.f32 %v523_v35  ;;  %331 = vst.msk [vmem:[#allocation4] sm:$0xff] %vm321_vm2, %v329_v36 }
 0x3cd   : > { %v343_v37 = vpop.permute.xlu1 %342 }
 0x3ce   : > { %346 = vst.msk [vmem:[#allocation4 + $0x8] sm:$0xff] %vm321_vm2, %v343_v37 }
 0x3d0   : > { %v1050_v38 = vpop.eup %1049 }
 0x3d1   : > { %v526_v39 = vmul.f32 %v1050_v38, %v1046_v30  ;;  %v351_v40 = vld [vmem:[#allocation4] sm:$0xff] }
 0x3d2   : > { %935 = vmatpush3.msra.mxu1 %v351_v40 }
 0x3d3   : > { %937 = vmatmul.mubr.msk.f32.vlgmr.msra.gmra.mrb[4].mxu1 %vm505_vm3, %v526_v39  ;;  %939 = vmatprep.subr.mxu1 %v1218_v1 }
 0x3d4   : > { %v1052_v41 = vpop.eup %1051  ;;  %941 = vmatprep.mubr.msk.f32.mxu1 %vm1217_vm0, %v1218_v1 }
 0x3d5   : > { %v527_v42 = vmul.f32 %v1052_v41, %v1048_v32  ;;  %v352_v43 = vld [vmem:[#allocation4 + $0x8] sm:$0xff] }
 0x3d6   : > { %940 = vmatpush3.msra.mxu1 %v352_v43 }
 0x3d7   : > { %942 = vmatmul.mubr.msk.f32.vlgmr.msra.gmra.mrb[6].mxu1 %vm505_vm3, %v527_v42 }
 0x4a6   : > { %v597_v50 = vpop.f32.mrb[4].mxu1 }
 0x4a7   : > { %674 = vst.msk [vmem:[#allocation5] sm:$0xff] %vm321_vm2, %v597_v50  ;;  %v938_v51 = vpop.f32.mrb[5].mxu1 }
 0x4aa   : > { %v670_v52 = vpop.f32.mrb[6].mxu1 }
 0x4ab   : > { %676 = vrot.lane.b32.xlu1 %v670_v52, %s1224_s6  ;;  %v943_v53 = vpop.f32.mrb[7].mxu1 }
 0x51d   : > { %v677_v54 = vpop.permute.xlu1 %676 }
 0x51e   : > { %680 = vst.msk [vmem:[#allocation5] sm:$0xff] %vm679_vm4, %v677_v54 }
 0x525   : > { %v681_v55 = vld [vmem:[#allocation5] sm:$0xff] }
 0x526   : > { %953 = vmatmul.mubr.msk.f32.vlgmr.msra.gmra.mrb[2].mxu0 %vm247_vm1, %v681_v55 }
 0x5f9   : > { %v762_v57 = vpop.f32.mrb[2].mxu0 }
 0x5fa   : > { %v763_v58 = vadd.f32 %v889_v56, %v762_v57  ;;  %v954_v59 = vpop.f32.mrb[3].mxu0 }
 0x5fc   : > { %766 = vst.msk [vmem:[%s241_s20] sm:$0xff] %vm247_vm1, %v763_v58 }
 0x5fd   : > { %1152 = shalt.err (!%p1149_p2)
}
 0x5fe   : > { %s1153_s29 = scalar_lea.hbm %s1482_s7, 128  ;;  %s1157_s5 = scalar_lea.hbm %s1531_s4, 256 }
 0x5ff   : > { %p1154_p13 = scmp.ne.s32.totalorder %s1482_s7, %s1153_s29  ;;  %p1158_p4 = scmp.lt.u32.totalorder %s1482_s7, %s1531_s4 }
 0x600   : > { %p1159_p5 = scmp.lt.u32.totalorder %s1157_s5, %s1153_s29  ;;  %p1161_p11 = scmp.lt.u32.totalorder %s1153_s29, %s1482_s7 }
 0x601   : > { %p1155_p6 = pnand %p1154_p13, %p1545_p0 }
 0x602   : > { %p1160_p8 = por %p1159_p5, %p1158_p4 }
 0x603   : > { %p1156_p10 = pneg %p1155_p6 }
 0x604   : > { %p1162_p1 = por %p1161_p11, %p1160_p8 }
 0x606   : > { %p1163_p3 = pnand %p1162_p1, %p1156_p10 }
 0x608   : > { %1166 = shalt.err (!%p1163_p3)
}
 0x609   : > { %977 = dma.vmem_to_hbm [thread:$0]  (%p1545_p0), %s1484_s28, 128, %s1482_s7, %s768_s8  }
 0x60a PF: > { %s793_s10 = sand.u32 1, %s1197_s15   ;;  %p1546_p7 = scmp.ne.s32.totalorder %s1536_s22, 0 }
 0x60b   : > { %p1547_p9 = scmp.ge.s32.totalorder %s1209_s18, 2  ;;  %s794_s24 = scalar_lea.sflag [#allocation8], %s793_s10 }
 0x60d   : > { %p991_p12 = pnand %p1547_p9, %p1546_p7 }
 0x60f   : > { %1192 = dma.done.wait (!%p991_p12), %s794_s24, 128  }
 0x610   : > { %1194 = vsyncadd (!%p991_p12), %s794_s24, 4294967168  ;;  %p18_p2 = scmp.ge.s32.totalorder %s1361_s9, 4   ;;  %s1548_s15 = smov %s1201_s16 }
 0x611   : > { %s1549_s16 = smov %s1205_s17  ;;  %s1550_s17 = smov %s1377_s14 }
 0x612   : > { %s1551_s18 = smov %s1361_s9  ;;  %20 = sbr.rel (!%p18_p2) target bundleno = 6 (0x6), region = 92 }
 0x619   :  { %799 = vsyncpa [#allocation7], 1 }
 0x61a   :  { %801 = vsyncpa [#allocation7 + $0x1], 1 }
 0x61b   :  { %802 = vsyncpa [#allocation10], 1 }
 0x61c   :  { %803 = vsyncpa [#allocation8], 1 }
 0x61d   :  { %805 = vsyncpa [#allocation8 + $0x1], 1 }

</bundles_post_ra>
